<compile_context>
chip_gen: v5e
topology: v5e:2x2
jax: 0.10.0
libtpu: 0.0.40
codegen_flags: <defaults>
</compile_context>

<pallas_src>
import math
import functools

import jax
import jax.numpy as jnp
from jax.experimental import pallas as pl
from jax.experimental.pallas import tpu as pltpu


def _arc_margin_kernel(label_ref, x_ref, w_ref, o_ref, wn_ref, *,
                       s, cos_m, sin_m, th, mm, easy_margin, tn, mxu_dtype):
    """Computes one (tb x tn) tile of the ArcFace logits."""
    j = pl.program_id(0)          # class-tile index (outer grid axis)
    i = pl.program_id(1)          # batch-tile index (inner grid axis)

    # Normalize the weight tile once per class tile and cache it (already in
    # MXU dtype) in VMEM scratch; batch-inner iterations reuse it.  Squared
    # norms are accumulated in f32 even if the weight streams as bf16.
    @pl.when(i == 0)
    def _():
        wf = w_ref[...].astype(jnp.float32)                          # (tn, D)
        eps2 = 1e-24                                                 # (1e-12)^2
        w_inv = jax.lax.rsqrt(
            jnp.maximum(jnp.sum(wf * wf, axis=-1, keepdims=True), eps2))
        wn_ref[...] = (wf * w_inv).astype(wn_ref.dtype)              # (tn, D)

    # x arrives pre-normalized from the wrapper, already at MXU width.
    x = x_ref[...]
    if x.dtype != mxu_dtype:
        x = x.astype(mxu_dtype)

    # cosine = x_n @ w_n.T without materializing a transpose: contract both
    # operands on their last (lane) dim; bf16 operands, f32 accumulation.
    cosine = jax.lax.dot_general(
        x, wn_ref[...],
        dimension_numbers=(((1,), (1,)), ((), ())),
        preferred_element_type=jnp.float32)                          # (tb, tn)

    # Margin math in f32.  Clamp 1 - cos^2 at 0 before the sqrt: rounding can
    # push |cosine| a ULP past 1 and NaN the sqrt (latent in the torch code).
    sine = jnp.sqrt(jnp.maximum(1.0 - cosine * cosine, 0.0))
    phi = cosine * cos_m - sine * sin_m
    if easy_margin:
        phi = jnp.where(cosine > 0.0, phi, cosine)
    else:
        phi = jnp.where(cosine > th, phi, cosine - mm)

    # One-hot "scatter" as a select against the LOCAL class index.
    col = jax.lax.broadcasted_iota(jnp.int32, cosine.shape, 1)
    target = label_ref[...] - j * tn                                 # (tb, 1)
    out = jnp.where(col == target, phi, cosine) * s
    o_ref[...] = out.astype(o_ref.dtype)


def _pick_class_tile(n, requested):
    """Largest class tile <= requested that divides n; prefer 256-multiples."""
    if n <= requested:
        return n
    for step in (256, 128):
        t = (requested // step) * step
        while t >= step:
            if n % t == 0:
                return t
            t -= step
    # TODO(synk): ragged N with no 128-aligned divisor falls back to a single
    # full-width tile; a production kernel would use pl.cdiv + a masked tail.
    return n


def _pick_batch_tile(b, requested):
    """Largest batch tile <= requested that divides b and is 8-aligned."""
    t = min(b, requested)
    if t == b:
        return b
    t = (t // 8) * 8
    while t >= 8:
        if b % t == 0:
            return t
        t -= 8
    return b


def arc_margin_forward(x, weight, label, *, s=30.0, m=0.5, easy_margin=False,
                       tn=1024, tb=None, out_dtype=jnp.float32,
                       mxu_dtype=jnp.bfloat16):
    """ArcFace forward.  For the best HBM use at real sizes, pass `weight`
    already in bf16 and consider out_dtype=bf16 (validated below)."""
    B, D = x.shape
    N, D2 = weight.shape
    assert D == D2, "feature dims of x and weight must match"

    tn = _pick_class_tile(N, tn)
    # Cap the batch tile so resident x + output double-buffers + f32
    # intermediates stay inside v7x's 64 MiB VMEM even at large B.
    tb = _pick_batch_tile(B, 512 if tb is None else tb)
    assert B % tb == 0 and N % tn == 0

    cos_m = math.cos(m)
    sin_m = math.sin(m)
    th = math.cos(math.pi - m)
    mm = math.sin(math.pi - m) * m

    # Normalize x once here (tiny BxD op) and stream it at MXU width; the
    # kernel never recomputes it across class tiles.
    xf = x.astype(jnp.float32)
    x_inv = jax.lax.rsqrt(
        jnp.maximum(jnp.sum(xf * xf, axis=-1, keepdims=True), 1e-24))
    x_n = (xf * x_inv).astype(mxu_dtype)

    label2d = label.astype(jnp.int32).reshape(B, 1)

    kernel = functools.partial(
        _arc_margin_kernel, s=s, cos_m=cos_m, sin_m=sin_m, th=th, mm=mm,
        easy_margin=easy_margin, tn=tn, mxu_dtype=mxu_dtype)

    mxu_sz = jnp.dtype(mxu_dtype).itemsize
    out_sz = jnp.dtype(out_dtype).itemsize
    vmem_est = (2 * tn * D * weight.dtype.itemsize   # weight stream (double-buffered)
                + 2 * tb * D * mxu_sz                # x tiles
                + 2 * tb * 4                         # label tiles
                + 2 * tb * tn * out_sz               # output tiles
                + tn * D * mxu_sz                    # normalized-weight scratch
                + tn * D * 4                         # f32 view during normalization
                + 4 * tb * tn * 4)                   # f32 dot/cos/sin/phi temps
    vmem_limit = int(min(max(vmem_est + (8 << 20), 32 << 20), 64 << 20))

    # Grid: class-outer (parallel, splits across TCs when N//tn >= 2),
    # batch-inner (arbitrary, sequential -> the pl.when weight-norm cache is
    # valid and each weight tile is DMAed exactly once).
    grid = (N // tn, B // tb)
    return pl.pallas_call(
        kernel,
        out_shape=jax.ShapeDtypeStruct((B, N), out_dtype),
        grid=grid,
        in_specs=[
            pl.BlockSpec((tb, 1), lambda j, i: (i, 0)),   # label column
            pl.BlockSpec((tb, D), lambda j, i: (i, 0)),   # normalized x
            pl.BlockSpec((tn, D), lambda j, i: (j, 0)),   # weight class tile
        ],
        out_specs=pl.BlockSpec((tb, tn), lambda j, i: (i, j)),
        scratch_shapes=[pltpu.VMEM((tn, D), mxu_dtype)],  # normalized w cache
        compiler_params=pltpu.CompilerParams(
            dimension_semantics=("parallel", "arbitrary"),
            vmem_limit_bytes=vmem_limit),
    )(label2d, x_n, weight)


def _reference_forward(x, weight, label, *, s=30.0, m=0.5, easy_margin=False):
    """Pure-JAX port of the torch module (for validation)."""
    eps = 1e-12
    x_n = x / jnp.maximum(jnp.linalg.norm(x, axis=1, keepdims=True), eps)
    w_n = weight / jnp.maximum(jnp.linalg.norm(weight, axis=1, keepdims=True), eps)
    cosine = x_n @ w_n.T
    sine = jnp.sqrt(jnp.maximum(1.0 - cosine ** 2, 0.0))
    phi = cosine * math.cos(m) - sine * math.sin(m)
    if easy_margin:
        phi = jnp.where(cosine > 0.0, phi, cosine)
    else:
        phi = jnp.where(cosine > math.cos(math.pi - m),
                        phi, cosine - math.sin(math.pi - m) * m)
    one_hot = jax.nn.one_hot(label, weight.shape[0], dtype=cosine.dtype)
    return (one_hot * phi + (1.0 - one_hot) * cosine) * s


if __name__ == "__main__":
    B = 8
    in_features = 32
    out_features = 256

    key = jax.random.PRNGKey(0)
    kx, kw, kl = jax.random.split(key, 3)

    x = jax.random.normal(kx, (B, in_features), dtype=jnp.float32)

    # xavier_uniform_ for weight of shape (out_features, in_features)
    bound = math.sqrt(6.0 / (in_features + out_features))
    weight = jax.random.uniform(kw, (out_features, in_features),
                                dtype=jnp.float32, minval=-bound, maxval=bound)

    label = jax.random.randint(kl, (B,), 0, out_features, dtype=jnp.int32)

    ref = _reference_forward(x, weight, label, s=30.0, m=0.5, easy_margin=False)

    # 1) Full-precision path (mxu_dtype=f32): tight check vs the f32 reference.
    out_f32 = arc_margin_forward(x, weight, label, s=30.0, m=0.5,
                                 easy_margin=False, mxu_dtype=jnp.float32)
    out_f32 = jax.block_until_ready(out_f32)
    assert out_f32.shape == (B, out_features)
    assert bool(jnp.allclose(out_f32, ref, atol=1e-3, rtol=1e-4)), \
        "f32 path mismatch vs reference"

    # 2) Default fast path (bf16 MXU operands, f32 accumulation): tolerance
    #    sized for bf16 operand rounding at s=30.
    out_fast = arc_margin_forward(x, weight, label, s=30.0, m=0.5,
                                  easy_margin=False)
    out_fast = jax.block_until_ready(out_fast)
    assert bool(jnp.allclose(out_fast, ref, atol=2e-1)), \
        "bf16-MXU path mismatch vs reference"

    # 3) bf16 weight streaming + bf16 logits (the main HBM levers at real
    #    ArcFace sizes): accuracy-checked against the f32 reference with a
    #    bf16-appropriate tolerance.
    out_bf16 = arc_margin_forward(x, weight.astype(jnp.bfloat16), label,
                                  s=30.0, m=0.5, easy_margin=False,
                                  out_dtype=jnp.bfloat16)
    out_bf16 = jax.block_until_ready(out_bf16)
    assert bool(jnp.isfinite(out_bf16.astype(jnp.float32)).all())
    assert bool(jnp.allclose(out_bf16.astype(jnp.float32), ref, atol=3e-1)), \
        "bf16-weight/bf16-out path mismatch vs reference"

    print("KERNEL_OK")
</pallas_src>

<mosaic_0001>
module attributes {stable_mosaic.version = 11 : i64} {
  func.func @_arc_margin_kernel(%arg0: i32, %arg1: i32, %arg2: memref<8x1xi32, #tpu.memory_space<vmem>>, %arg3: memref<8x32xf32, #tpu.memory_space<vmem>>, %arg4: memref<256x32xf32, #tpu.memory_space<vmem>>, %arg5: memref<8x256xf32, #tpu.memory_space<vmem>>, %arg6: memref<256x32xf32, #tpu.memory_space<vmem>>) attributes {dimension_semantics = [#tpu.dimension_semantics<parallel>, #tpu.dimension_semantics<arbitrary>], iteration_bounds = array<i64: 1, 1>, scalar_prefetch = 0 : i64, scratch_operands = 1 : i64, tpu.core_type = #tpu.core_type<tc>, window_params = [{transform_indices = @transform_0, window_bounds = array<i64: 8, 1>}, {transform_indices = @transform_1, window_bounds = array<i64: 8, 32>}, {transform_indices = @transform_2, window_bounds = array<i64: 256, 32>}, {transform_indices = @transform_3, window_bounds = array<i64: 8, 256>}]} {
    %c0_i32 = arith.constant 0 : i32
    %0 = arith.cmpi eq, %arg1, %c0_i32 : i32
    %1 = arith.extui %0 : i1 to i32
    %c0_i32_0 = arith.constant 0 : i32
    %2 = arith.cmpi ne, %1, %c0_i32_0 : i32
    scf.if %2 {
      %c0_15 = arith.constant 0 : index
      %c0_16 = arith.constant 0 : index
      %33 = vector.load %arg4[%c0_15, %c0_16] : memref<256x32xf32, #tpu.memory_space<vmem>>, vector<256x32xf32>
      %34 = arith.mulf %33, %33 : vector<256x32xf32>
      %cst_17 = arith.constant dense<0.000000e+00> : vector<256xf32>
      %35 = vector.multi_reduction <add>, %34, %cst_17 [1] : vector<256x32xf32> to vector<256xf32>
      %36 = vector.shape_cast %35 : vector<256xf32> to vector<256x1xf32>
      %cst_18 = arith.constant 1.000000e-24 : f32
      %37 = vector.broadcast %cst_18 : f32 to vector<256x1xf32>
      %38 = arith.maximumf %36, %37 : vector<256x1xf32>
      %39 = math.rsqrt %38 : vector<256x1xf32>
      %40 = vector.broadcast %39 : vector<256x1xf32> to vector<256x32xf32>
      %41 = arith.mulf %33, %40 : vector<256x32xf32>
      %c0_19 = arith.constant 0 : index
      %c0_20 = arith.constant 0 : index
      %42 = vector.load %arg6[%c0_19, %c0_20] : memref<256x32xf32, #tpu.memory_space<vmem>>, vector<256x32xf32>
      tpu.vector_store %arg6[%c0_19, %c0_20], %41 {strides = array<i32>} : memref<256x32xf32, #tpu.memory_space<vmem>>, vector<256x32xf32>,
    } else {
    }
    %c0 = arith.constant 0 : index
    %c0_1 = arith.constant 0 : index
    %3 = vector.load %arg3[%c0, %c0_1] : memref<8x32xf32, #tpu.memory_space<vmem>>, vector<8x32xf32>
    %c0_2 = arith.constant 0 : index
    %c0_3 = arith.constant 0 : index
    %4 = vector.load %arg6[%c0_2, %c0_3] : memref<256x32xf32, #tpu.memory_space<vmem>>, vector<256x32xf32>
    %cst = arith.constant dense<0.000000e+00> : vector<8x256xf32>
    %5 = tpu.matmul %3, %4, %cst {dimension_numbers = #tpu.dot_dimension_numbers<[1], [1], [0], [0], [0, 0, 1, 0], [], []>} : vector<8x32xf32>, vector<256x32xf32>, vector<8x256xf32> -> vector<8x256xf32>
    %6 = arith.mulf %5, %5 : vector<8x256xf32>
    %cst_4 = arith.constant 1.000000e+00 : f32
    %7 = vector.broadcast %cst_4 : f32 to vector<8x256xf32>
    %8 = arith.subf %7, %6 : vector<8x256xf32>
    %cst_5 = arith.constant 0.000000e+00 : f32
    %9 = vector.broadcast %cst_5 : f32 to vector<8x256xf32>
    %10 = arith.maximumf %8, %9 : vector<8x256xf32>
    %11 = math.sqrt %10 : vector<8x256xf32>
    %cst_6 = arith.constant 0.87758255 : f32
    %12 = vector.broadcast %cst_6 : f32 to vector<8x256xf32>
    %13 = arith.mulf %5, %12 : vector<8x256xf32>
    %cst_7 = arith.constant 0.47942555 : f32
    %14 = vector.broadcast %cst_7 : f32 to vector<8x256xf32>
    %15 = arith.mulf %11, %14 : vector<8x256xf32>
    %16 = arith.subf %13, %15 : vector<8x256xf32>
    %cst_8 = arith.constant -0.87758255 : f32
    %17 = vector.broadcast %cst_8 : f32 to vector<8x256xf32>
    %18 = arith.cmpf ogt, %5, %17 : vector<8x256xf32>
    %cst_9 = arith.constant 0.239712775 : f32
    %19 = vector.broadcast %cst_9 : f32 to vector<8x256xf32>
    %20 = arith.subf %5, %19 : vector<8x256xf32>
    %21 = arith.select %18, %16, %20 : vector<8x256xi1>, vector<8x256xf32>
    %22 = tpu.iota {dimensions = array<i32: 1>} : vector<8x256xi32>
    %c0_10 = arith.constant 0 : index
    %c0_11 = arith.constant 0 : index
    %23 = vector.load %arg2[%c0_10, %c0_11] : memref<8x1xi32, #tpu.memory_space<vmem>>, vector<8x1xi32>
    %c256_i32 = arith.constant 256 : i32
    %24 = arith.muli %arg0, %c256_i32 : i32
    %25 = vector.broadcast %24 : i32 to vector<8x1xi32>
    %26 = arith.subi %23, %25 : vector<8x1xi32>
    %27 = vector.broadcast %26 : vector<8x1xi32> to vector<8x256xi32>
    %28 = arith.cmpi eq, %22, %27 : vector<8x256xi32>
    %29 = arith.select %28, %21, %5 : vector<8x256xi1>, vector<8x256xf32>
    %cst_12 = arith.constant 3.000000e+01 : f32
    %30 = vector.broadcast %cst_12 : f32 to vector<8x256xf32>
    %31 = arith.mulf %29, %30 : vector<8x256xf32>
    %c0_13 = arith.constant 0 : index
    %c0_14 = arith.constant 0 : index
    %32 = vector.load %arg5[%c0_13, %c0_14] : memref<8x256xf32, #tpu.memory_space<vmem>>, vector<8x256xf32>
    tpu.vector_store %arg5[%c0_13, %c0_14], %31 {strides = array<i32>} : memref<8x256xf32, #tpu.memory_space<vmem>>, vector<8x256xf32>,
    return
  }
  func.func @transform_0(%arg0: i32, %arg1: i32) -> (i32, i32) {
    %c0_i32 = arith.constant 0 : i32
    %c0_i32_0 = arith.constant 0 : i32
    return %arg1, %c0_i32 : i32, i32
  }
  func.func @transform_1(%arg0: i32, %arg1: i32) -> (i32, i32) {
    %c0_i32 = arith.constant 0 : i32
    %c0_i32_0 = arith.constant 0 : i32
    return %arg1, %c0_i32 : i32, i32
  }
  func.func @transform_2(%arg0: i32, %arg1: i32) -> (i32, i32) {
    %c0_i32 = arith.constant 0 : i32
    %c0_i32_0 = arith.constant 0 : i32
    return %arg0, %c0_i32 : i32, i32
  }
  func.func @transform_3(%arg0: i32, %arg1: i32) -> (i32, i32) {
    %c0_i32 = arith.constant 0 : i32
    return %arg1, %arg0 : i32, i32
  }
}

</mosaic_0001>

<bundles_post_ra>
// kernel: tpu_custom_call.1
= control target key start
LH: loop header
LB: loop body
LE: loop exit
PB: predicated region body
PF: predicated region fallthrough
CT: control target
= control target key end

     0   :  { %vm83_vm0 = vcmask 261120   ;;  %s1797_s0 = inlined_call_operand.vmem [shape: s32[8,1], index: 0, kind: input, shape index: {}]   ;;  %s1798_s1 = inlined_call_operand.vmem [shape: f32[8,32], index: 1, kind: input, shape index: {}]   ;;  %s1799_s2 = inlined_call_operand.vmem [shape: f32[256,32], index: 2, kind: input, shape index: {}]   ;;  %s1800_s3 = inlined_call_operand.hbm [shape: f32[8,256], index: 3, kind: output, shape index: {}]  }
   0x1   :  { %v1011_v0 = vld [vmem:[%s1799_s2 + $0x78] sm:$0xff]  ;;  %v1016_v1 = vld [vmem:[%s1799_s2 + $0x70] sm:$0xff]  ;;  %v1021_v2 = vld [vmem:[%s1799_s2 + $0x68] sm:$0xff] }
   0x2   :  { %v66_v3 = vmul.f32 %v1011_v0, %v1011_v0  ;;  %v65_v4 = vmul.f32 %v1016_v1, %v1016_v1  ;;  %v64_v5 = vmul.f32 %v1021_v2, %v1021_v2  ;;  %v1032_v6 = vld [vmem:[%s1799_s2 + $0xf8] sm:$0xff]  ;;  %v1037_v7 = vld [vmem:[%s1799_s2 + $0xf0] sm:$0xff]  ;;  %v1045_v11 = vld [vmem:[%s1799_s2 + $0xe8] sm:$0xff] }
   0x3   :  { %v82_v12 = vmul.f32 %v1032_v6, %v1032_v6  ;;  %v81_v13 = vmul.f32 %v1037_v7, %v1037_v7 }
   0x4   :  { %v129_v8 = vsel %vm83_vm0, %v66_v3, 0.0  ;;  %v126_v9 = vsel %vm83_vm0, %v65_v4, 0.0  ;;  %v123_v10 = vsel %vm83_vm0, %v64_v5, 0.0 }
   0x5   :  { %130 = vadd.xlane.f32.xlu0 %v129_v8  ;;  %127 = vadd.xlane.f32.xlu1 %v126_v9 }
   0x6   :  { %124 = vadd.xlane.f32.xlu2 %v123_v10 }
   0x7   :  { %8 = vsyncpa [#allocation4], 0  ;;  %v80_v14 = vmul.f32 %v1045_v11, %v1045_v11  ;;  %v177_v15 = vsel %vm83_vm0, %v82_v12, 0.0  ;;  %v174_v16 = vsel %vm83_vm0, %v81_v13, 0.0  ;;  %v1059_v18 = vld [vmem:[%s1799_s2 + $0xe0] sm:$0xff]  ;;  %v1069_v20 = vld [vmem:[%s1799_s2 + $0x58] sm:$0xff] }
   0x8   :  { %v1064_v19 = vld [vmem:[%s1799_s2 + $0x60] sm:$0xff]  ;;  %v79_v21 = vmul.f32 %v1059_v18, %v1059_v18  ;;  %v62_v23 = vmul.f32 %v1069_v20, %v1069_v20  ;;  %v1083_v27 = vld [vmem:[%s1799_s2 + $0xd8] sm:$0xff]  ;;  %v1088_v28 = vld [vmem:[%s1799_s2 + $0x50] sm:$0xff]  ;;  %s836_s14 = sshll.u32 %s1800_s3, 4  ;;  %s837_s14 = int_to_ptr.hbm [resolvable:$true] %s836_s14 }
   0x9   :  { %v171_v17 = vsel %vm83_vm0, %v80_v14, 0.0  ;;  %v63_v22 = vmul.f32 %v1064_v19, %v1064_v19  ;;  %v1093_v29 = vld [vmem:[%s1799_s2 + $0xd0] sm:$0xff]  ;;  %v78_v30 = vmul.f32 %v1083_v27, %v1083_v27  ;;  %v61_v31 = vmul.f32 %v1088_v28, %v1088_v28  ;;  %v1107_v36 = vld [vmem:[%s1799_s2 + $0xc8] sm:$0xff]  ;;  %v1117_v38 = vld [vmem:[%s1799_s2 + $0x40] sm:$0xff] }
   0xa   :  { %v168_v24 = vsel %vm83_vm0, %v79_v21, 0.0  ;;  %v117_v26 = vsel %vm83_vm0, %v62_v23, 0.0  ;;  %v77_v32 = vmul.f32 %v1093_v29, %v1093_v29  ;;  %v1112_v37 = vld [vmem:[%s1799_s2 + $0x48] sm:$0xff]  ;;  %v76_v39 = vmul.f32 %v1107_v36, %v1107_v36  ;;  %v1131_v45 = vld [vmem:[%s1799_s2 + $0xc0] sm:$0xff]  ;;  %v1136_v46 = vld [vmem:[%s1799_s2 + $0x38] sm:$0xff] }
   0xb   :  { %v120_v25 = vsel %vm83_vm0, %v63_v22, 0.0  ;;  %v165_v33 = vsel %vm83_vm0, %v78_v30, 0.0  ;;  %v114_v34 = vsel %vm83_vm0, %v61_v31, 0.0  ;;  %v60_v40 = vmul.f32 %v1112_v37, %v1112_v37  ;;  %v1141_v47 = vld [vmem:[%s1799_s2 + $0xb8] sm:$0xff]  ;;  %v1155_v54 = vld [vmem:[%s1799_s2 + $0xb0] sm:$0xff]  ;;  %v1165_v56 = vld [vmem:[%s1799_s2 + $0x28] sm:$0xff] }
   0xc   :  { %v162_v35 = vsel %vm83_vm0, %v77_v32, 0.0  ;;  %v59_v41 = vmul.f32 %v1117_v38, %v1117_v38  ;;  %v159_v42 = vsel %vm83_vm0, %v76_v39, 0.0  ;;  %v75_v48 = vmul.f32 %v1131_v45, %v1131_v45  ;;  %v1160_v55 = vld [vmem:[%s1799_s2 + $0x30] sm:$0xff]  ;;  %v1179_v63 = vld [vmem:[%s1799_s2 + $0xa8] sm:$0xff]  ;;  %v1184_v3 = vld [vmem:[%s1799_s2 + $0x20] sm:$0xff] }
   0xd   :  { %178 = vadd.xlane.f32.xlu0 %v177_v15  ;;  %175 = vadd.xlane.f32.xlu1 %v174_v16  ;;  %v111_v43 = vsel %vm83_vm0, %v60_v40, 0.0  ;;  %v58_v49 = vmul.f32 %v1136_v46, %v1136_v46  ;;  %v74_v50 = vmul.f32 %v1141_v47, %v1141_v47  ;;  %v73_v57 = vmul.f32 %v1155_v54, %v1155_v54  ;;  %v1189_v4 = vld [vmem:[%s1799_s2 + $0xa0] sm:$0xff]  ;;  %v1203_v14 = vld [vmem:[%s1799_s2 + $0x98] sm:$0xff]  ;;  %v21_v16 = vld [vmem:[%s1799_s2 + $0x10] sm:$0xff] }
   0xe   :  { %172 = vadd.xlane.f32.xlu2 %v171_v17  ;;  %v108_v44 = vsel %vm83_vm0, %v59_v41, 0.0  ;;  %v156_v51 = vsel %vm83_vm0, %v75_v48, 0.0  ;;  %v57_v58 = vmul.f32 %v1160_v55, %v1160_v55  ;;  %v56_v59 = vmul.f32 %v1165_v56, %v1165_v56  ;;  %v22_v15 = vld [vmem:[%s1799_s2 + $0x18] sm:$0xff]  ;;  %v20_v30 = vld [vmem:[%s1799_s2 + $0x8] sm:$0xff]  ;;  %v35_v41 = vld [vmem:[%s1799_s2 + $0x80] sm:$0xff] }
   0xf   :  { %v105_v52 = vsel %vm83_vm0, %v58_v49, 0.0  ;;  %v153_v53 = vsel %vm83_vm0, %v74_v50, 0.0  ;;  %v150_v60 = vsel %vm83_vm0, %v73_v57, 0.0  ;;  %v72_v5 = vmul.f32 %v1179_v63, %v1179_v63  ;;  %v36_v31 = vld [vmem:[%s1799_s2 + $0x88] sm:$0xff] }
  0x10   :  { %v102_v61 = vsel %vm83_vm0, %v57_v58, 0.0  ;;  %v99_v62 = vsel %vm83_vm0, %v56_v59, 0.0  ;;  %v55_v8 = vmul.f32 %v1184_v3, %v1184_v3  ;;  %v71_v9 = vmul.f32 %v1189_v4, %v1189_v4 }
  0x11   :  { %v147_v10 = vsel %vm83_vm0, %v72_v5, 0.0  ;;  %v70_v17 = vmul.f32 %v1203_v14, %v1203_v14  ;;  %v54_v21 = vmul.f32 %v22_v15, %v22_v15  ;;  %v53_v22 = vmul.f32 %v21_v16, %v21_v16 }
  0x12   :  { %v96_v12 = vsel %vm83_vm0, %v55_v8, 0.0  ;;  %v144_v13 = vsel %vm83_vm0, %v71_v9, 0.0 }
  0x13   :  { %v141_v23 = vsel %vm83_vm0, %v70_v17, 0.0 }
  0x15   :  { %169 = vadd.xlane.f32.xlu1 %v168_v24  ;;  %121 = vadd.xlane.f32.xlu0 %v120_v25  ;;  %v93_v24 = vsel %vm83_vm0, %v54_v21, 0.0  ;;  %v90_v25 = vsel %vm83_vm0, %v53_v22, 0.0 }
  0x16   :  { %118 = vadd.xlane.f32.xlu2 %v117_v26  ;;  %v37_v26 = vld [vmem:[%s1799_s2 + $0x90] sm:$0xff] }
  0x17   :  { %v69_v32 = vmul.f32 %v37_v26, %v37_v26 }
  0x1d   :  { %166 = vadd.xlane.f32.xlu0 %v165_v33  ;;  %115 = vadd.xlane.f32.xlu1 %v114_v34  ;;  %v52_v33 = vmul.f32 %v20_v30, %v20_v30  ;;  %v68_v34 = vmul.f32 %v36_v31, %v36_v31 }
  0x1e   :  { %163 = vadd.xlane.f32.xlu2 %v162_v35  ;;  %v138_v35 = vsel %vm83_vm0, %v69_v32, 0.0 }
  0x1f   :  { %v87_v39 = vsel %vm83_vm0, %v52_v33, 0.0  ;;  %v135_v40 = vsel %vm83_vm0, %v68_v34, 0.0 }
  0x25   :  { %160 = vadd.xlane.f32.xlu1 %v159_v42  ;;  %112 = vadd.xlane.f32.xlu0 %v111_v43  ;;  %v19_v42 = vld [vmem:[%s1799_s2] sm:$0xff]  ;;  %v67_v43 = vmul.f32 %v35_v41, %v35_v41 }
  0x26   :  { %109 = vadd.xlane.f32.xlu2 %v108_v44  ;;  %v51_v44 = vmul.f32 %v19_v42, %v19_v42 }
  0x27   :  { %v132_v48 = vsel %vm83_vm0, %v67_v43, 0.0 }
  0x28   :  { %v84_v49 = vsel %vm83_vm0, %v51_v44, 0.0 }
  0x2d   :  { %157 = vadd.xlane.f32.xlu0 %v156_v51  ;;  %106 = vadd.xlane.f32.xlu1 %v105_v52 }
  0x2e   :  { %154 = vadd.xlane.f32.xlu2 %v153_v53 }
  0x35   :  { %151 = vadd.xlane.f32.xlu1 %v150_v60  ;;  %103 = vadd.xlane.f32.xlu0 %v102_v61 }
  0x36   :  { %100 = vadd.xlane.f32.xlu2 %v99_v62 }
  0x3d   :  { %148 = vadd.xlane.f32.xlu0 %v147_v10  ;;  %97 = vadd.xlane.f32.xlu1 %v96_v12 }
  0x3e   :  { %145 = vadd.xlane.f32.xlu2 %v144_v13 }
  0x45   :  { %142 = vadd.xlane.f32.xlu1 %v141_v23  ;;  %94 = vadd.xlane.f32.xlu0 %v93_v24 }
  0x46   :  { %91 = vadd.xlane.f32.xlu2 %v90_v25 }
  0x4d   :  { %139 = vadd.xlane.f32.xlu0 %v138_v35  ;;  %88 = vadd.xlane.f32.xlu1 %v87_v39 }
  0x4e   :  { %136 = vadd.xlane.f32.xlu2 %v135_v40 }
  0x55   :  { %133 = vadd.xlane.f32.xlu1 %v132_v48  ;;  %85 = vadd.xlane.f32.xlu0 %v84_v49 }
  0x78   :  { %v131_v50 = vpop.xlane.xlu0 %130  ;;  %v128_v51 = vpop.xlane.xlu1 %127 }
  0x79   :  { %v195_v52 = vmax.f32 %v131_v50, 1e-24  ;;  %v194_v53 = vmax.f32 %v128_v51, 1e-24  ;;  %v125_v57 = vpop.xlane.xlu2 %124 }
  0x7a   :  { %v193_v58 = vmax.f32 %v125_v57, 1e-24 }
  0x7b   :  { %885 = vrsqrt.f32 %v195_v52  ;;  %vm368_vm1 = vweird.f32 %v195_v52  ;;  %vm358_vm3 = vweird.f32 %v194_v53 }
  0x7c   :  { %887 = vrsqrt.f32 %v194_v53  ;;  %vm348_vm5 = vweird.f32 %v193_v58 }
  0x7d   :  { %889 = vrsqrt.f32 %v193_v58 }
  0x80   :  { %v179_v59 = vpop.xlane.xlu0 %178  ;;  %v176_v60 = vpop.xlane.xlu1 %175 }
  0x81   :  { %v886_v61 = vpop.eup %885  ;;  %v1236_v62 = vmax.f32 %v179_v59, 1e-24  ;;  %v1238_v5 = vmax.f32 %v176_v60, 1e-24  ;;  %v173_v8 = vpop.xlane.xlu2 %172 }
  0x82   :  { %v888_v9 = vpop.eup %887  ;;  %v363_v10 = vmul.f32 %v886_v61, %v195_v52  ;;  %v1240_v12 = vmax.f32 %v173_v8, 1e-24  ;;  %vm369_vm2 = vweird.f32 %v886_v61 }
  0x83   :  { %v890_v13 = vpop.eup %889  ;;  %v353_v15 = vmul.f32 %v888_v9, %v194_v53  ;;  %891 = vrsqrt.f32 %v1236_v62  ;;  %vm359_vm4 = vweird.f32 %v888_v9  ;;  %vm370_vm7 = vmor %vm368_vm1, %vm369_vm2  ;;  %vm528_vm10 = vweird.f32 %v1236_v62 }
  0x84   :  { %v364_v16 = vmul.f32 %v886_v61, %v363_v10  ;;  %v343_v17 = vmul.f32 %v890_v13, %v193_v58  ;;  %893 = vrsqrt.f32 %v1238_v5  ;;  %vm349_vm6 = vweird.f32 %v890_v13  ;;  %vm360_vm8 = vmor %vm358_vm3, %vm359_vm4 }
  0x85   :  { %v354_v21 = vmul.f32 %v888_v9, %v353_v15  ;;  %895 = vrsqrt.f32 %v1240_v12  ;;  %vm350_vm9 = vmor %vm348_vm5, %vm349_vm6  ;;  %vm518_vm15 = vweird.f32 %v1238_v5  ;;  %vm508_vm1 = vweird.f32 %v1240_v12 }
  0x86   :  { %v365_v22 = vmul.f32 0.5, %v364_v16  ;;  %v344_v23 = vmul.f32 %v890_v13, %v343_v17 }
  0x87   :  { %v355_v24 = vmul.f32 0.5, %v354_v21 }
  0x88   :  { %v366_v25 = vsub.f32 1.5, %v365_v22  ;;  %v345_v26 = vmul.f32 0.5, %v344_v23  ;;  %v170_v30 = vpop.xlane.xlu1 %169  ;;  %v122_v31 = vpop.xlane.xlu0 %121 }
  0x89   :  { %v1245_v32 = vpop.eup %891  ;;  %v356_v33 = vsub.f32 1.5, %v355_v24  ;;  %v1247_v34 = vmax.f32 %v170_v30, 1e-24  ;;  %v119_v35 = vpop.xlane.xlu2 %118  ;;  %v1260_v49 = vmax.f32 %v122_v31, 1e-24 }
  0x8a   :  { %v1249_v39 = vpop.eup %893  ;;  %v367_v40 = vmul.f32 %v886_v61, %v366_v25  ;;  %v346_v41 = vsub.f32 1.5, %v345_v26  ;;  %v523_v42 = vmul.f32 %v1245_v32, %v1236_v62  ;;  %vm529_vm11 = vweird.f32 %v1245_v32 }
  0x8b   :  { %v1253_v43 = vpop.eup %895  ;;  %v357_v44 = vmul.f32 %v888_v9, %v356_v33  ;;  %v513_v48 = vmul.f32 %v1249_v39, %v1238_v5  ;;  %897 = vrsqrt.f32 %v1247_v34  ;;  %vm519_vm12 = vweird.f32 %v1249_v39  ;;  %vm530_vm14 = vmor %vm528_vm10, %vm529_vm11 }
  0x8c   :  { %v371_v50 = vsel %vm370_vm7, %v886_v61, %v367_v40  ;;  %v347_v51 = vmul.f32 %v890_v13, %v346_v41  ;;  %v524_v57 = vmul.f32 %v1245_v32, %v523_v42  ;;  %v503_v59 = vmul.f32 %v1253_v43, %v1240_v12  ;;  %vm520_vm2 = vmor %vm518_vm15, %vm519_vm12 }
  0x8d   :  { %v547_v52 = vmul.f32 %v371_v50, %v1011_v0  ;;  %v361_v60 = vsel %vm360_vm8, %v888_v9, %v357_v44  ;;  %v514_v8 = vmul.f32 %v1249_v39, %v513_v48  ;;  %899 = vrsqrt.f32 %v1260_v49 }
  0x8e   :  { %v546_v10 = vmul.f32 %v361_v60, %v1016_v1  ;;  %v351_v61 = vsel %vm350_vm9, %v890_v13, %v347_v51  ;;  %v525_v15 = vmul.f32 0.5, %v524_v57  ;;  %v504_v53 = vmul.f32 %v1253_v43, %v503_v59 }
  0x8f   :  { %579 = vst.msk [vmem:[#allocation2 + $0x78] sm:$0xff] %vm83_vm0, %v547_v52  ;;  %v545_v16 = vmul.f32 %v351_v61, %v1021_v2  ;;  %v515_v17 = vmul.f32 0.5, %v514_v8  ;;  %v1279_v1 = vmax.f32 %v119_v35, 1e-24  ;;  %vm509_vm13 = vweird.f32 %v1253_v43 }
  0x90   :  { %578 = vst.msk [vmem:[#allocation2 + $0x70] sm:$0xff] %vm83_vm0, %v546_v10  ;;  %v526_v0 = vsub.f32 1.5, %v525_v15  ;;  %v505_v58 = vmul.f32 0.5, %v504_v53  ;;  %v167_v9 = vpop.xlane.xlu0 %166  ;;  %v116_v13 = vpop.xlane.xlu1 %115  ;;  %vm510_vm3 = vmor %vm508_vm1, %vm509_vm13  ;;  %vm498_vm5 = vweird.f32 %v1247_v34  ;;  %vm338_vm6 = vweird.f32 %v1260_v49 }
  0x91   :  { %v1281_v21 = vpop.eup %897  ;;  %577 = vst.msk [vmem:[#allocation2 + $0x68] sm:$0xff] %vm83_vm0, %v545_v16  ;;  %v516_v2 = vsub.f32 1.5, %v515_v17  ;;  %v1285_v22 = vmax.f32 %v167_v9, 1e-24  ;;  %v164_v23 = vpop.xlane.xlu2 %163  ;;  %v1287_v24 = vmax.f32 %v116_v13, 1e-24  ;;  %901 = vrsqrt.f32 %v1279_v1 }
  0x92   :  { %v527_v25 = vmul.f32 %v1245_v32, %v526_v0  ;;  %v506_v26 = vsub.f32 1.5, %v505_v58  ;;  %v493_v30 = vmul.f32 %v1281_v21, %v1247_v34  ;;  %v1311_v5 = vmax.f32 %v164_v23, 1e-24 }
  0x93   :  { %v517_v31 = vmul.f32 %v1249_v39, %v516_v2  ;;  %903 = vrsqrt.f32 %v1285_v22  ;;  %v1305_v41 = vpop.eup %899  ;;  %vm499_vm4 = vweird.f32 %v1281_v21  ;;  %vm328_vm9 = vweird.f32 %v1279_v1 }
  0x94   :  { %v531_v33 = vsel %vm530_vm14, %v1245_v32, %v527_v25  ;;  %v507_v35 = vmul.f32 %v1253_v43, %v506_v26  ;;  %v494_v40 = vmul.f32 %v1281_v21, %v493_v30  ;;  %905 = vrsqrt.f32 %v1287_v24  ;;  %vm500_vm7 = vmor %vm498_vm5, %vm499_vm4 }
  0x95   :  { %v563_v62 = vmul.f32 %v531_v33, %v1032_v6  ;;  %v521_v42 = vsel %vm520_vm2, %v1249_v39, %v517_v31  ;;  %v333_v48 = vmul.f32 %v1305_v41, %v1260_v49  ;;  %907 = vrsqrt.f32 %v1311_v5 }
  0x96   :  { %v562_v12 = vmul.f32 %v521_v42, %v1037_v7  ;;  %v511_v32 = vsel %vm510_vm3, %v1253_v43, %v507_v35  ;;  %v495_v44 = vmul.f32 0.5, %v494_v40  ;;  %v612_v50 = vld [vmem:[#allocation2 + $0x78] sm:$0xff]  ;;  %vm339_vm8 = vweird.f32 %v1305_v41 }
  0x97   :  { %595 = vst.msk [vmem:[#allocation2 + $0xf8] sm:$0xff] %vm83_vm0, %v563_v62  ;;  %v561_v6 = vmul.f32 %v511_v32, %v1045_v11  ;;  %845 = vmatpush.xpose.msk.msra.mxu0 %vm83_vm0, %v612_v50  ;;  %v334_v7 = vmul.f32 %v1305_v41, %v333_v48  ;;  %v1325_v57 = vpop.eup %901  ;;  %v611_v15 = vld [vmem:[#allocation2 + $0x70] sm:$0xff]  ;;  %vm488_vm10 = vweird.f32 %v1285_v22  ;;  %vm478_vm11 = vweird.f32 %v1311_v5  ;;  %vm340_vm12 = vmor %vm338_vm6, %vm339_vm8 }
  0x98   :  { %594 = vst.msk [vmem:[#allocation2 + $0xf0] sm:$0xff] %vm83_vm0, %v562_v12  ;;  %v496_v39 = vsub.f32 1.5, %v495_v44  ;;  %v161_v43 = vpop.xlane.xlu1 %160  ;;  %v113_v51 = vpop.xlane.xlu0 %112  ;;  %v323_v61 = vmul.f32 %v1325_v57, %v1279_v1  ;;  %v610_v26 = vld [vmem:[#allocation2 + $0x68] sm:$0xff]  ;;  %vm329_vm13 = vweird.f32 %v1325_v57  ;;  %vm318_vm4 = vweird.f32 %v1287_v24 }
  0x99   :  { %593 = vst.msk [vmem:[#allocation2 + $0xe8] sm:$0xff] %vm83_vm0, %v561_v6  ;;  %v1329_v11 = vmax.f32 %v161_v43, 1e-24  ;;  %v1331_v59 = vmax.f32 %v113_v51, 1e-24  ;;  %v110_v52 = vpop.xlane.xlu2 %109  ;;  %v1333_v60 = vpop.eup %903  ;;  %v335_v10 = vmul.f32 0.5, %v334_v7  ;;  %vm330_vm1 = vmor %vm328_vm9, %vm329_vm13 }
  0x9a   :  { %v497_v8 = vmul.f32 %v1281_v21, %v496_v39  ;;  %v1339_v53 = vpop.eup %905  ;;  %v483_v34 = vmul.f32 %v1333_v60, %v1285_v22  ;;  %v324_v0 = vmul.f32 %v1325_v57, %v323_v61  ;;  %v1370_v33 = vmax.f32 %v110_v52, 1e-24 }
  0x9b   :  { %909 = vrsqrt.f32 %v1329_v11  ;;  %846 = vmatpush.xpose.msk.msra.mxu0 %vm83_vm0, %v611_v15  ;;  %v336_v17 = vsub.f32 1.5, %v335_v10  ;;  %v313_v58 = vmul.f32 %v1339_v53, %v1287_v24  ;;  %v1353_v9 = vpop.eup %907  ;;  %vm489_vm14 = vweird.f32 %v1333_v60 }
  0x9c   :  { %v501_v16 = vsel %vm500_vm7, %v1281_v21, %v497_v8  ;;  %v484_v2 = vmul.f32 %v1333_v60, %v483_v34  ;;  %911 = vrsqrt.f32 %v1331_v59  ;;  %v325_v25 = vmul.f32 0.5, %v324_v0  ;;  %vm490_vm3 = vmor %vm488_vm10, %vm489_vm14 }
  0x9d   :  { %v560_v13 = vmul.f32 %v501_v16, %v1059_v18  ;;  %v337_v23 = vmul.f32 %v1305_v41, %v336_v17  ;;  %v473_v21 = vmul.f32 %v1353_v9, %v1311_v5  ;;  %v314_v31 = vmul.f32 %v1339_v53, %v313_v58 }
  0x9e   :  { %v628_v30 = vld [vmem:[#allocation2 + $0xf8] sm:$0xff]  ;;  %v485_v18 = vmul.f32 0.5, %v484_v2  ;;  %v326_v40 = vsub.f32 1.5, %v325_v25  ;;  %913 = vrsqrt.f32 %v1370_v33  ;;  %vm319_vm15 = vweird.f32 %v1339_v53 }
  0x9f   :  { %592 = vst.msk [vmem:[#allocation2 + $0xe0] sm:$0xff] %vm83_vm0, %v560_v13  ;;  %847 = vmatpush.xpose.msk.msra.mxu0 %vm83_vm0, %v610_v26  ;;  %862 = vmatpush.xpose.msk.msra.mxu1 %vm83_vm0, %v628_v30  ;;  %v341_v35 = vsel %vm340_vm12, %v1305_v41, %v337_v23  ;;  %v474_v62 = vmul.f32 %v1353_v9, %v473_v21  ;;  %v315_v48 = vmul.f32 0.5, %v314_v31  ;;  %v627_v7 = vld [vmem:[#allocation2 + $0xf0] sm:$0xff]  ;;  %vm479_vm2 = vweird.f32 %v1353_v9  ;;  %vm320_vm5 = vmor %vm318_vm4, %vm319_vm15 }
  0xa0   :  { %v158_v49 = vpop.xlane.xlu0 %157  ;;  %v107_v42 = vpop.xlane.xlu1 %106  ;;  %v544_v32 = vmul.f32 %v341_v35, %v1064_v19  ;;  %v486_v44 = vsub.f32 1.5, %v485_v18  ;;  %v327_v6 = vmul.f32 %v1325_v57, %v326_v40  ;;  %v626_v58 = vld [vmem:[#allocation2 + $0xe8] sm:$0xff]  ;;  %vm480_vm6 = vmor %vm478_vm11, %vm479_vm2  ;;  %vm468_vm8 = vweird.f32 %v1329_v11 }
  0xa1   :  { %v1377_v12 = vpop.eup %909  ;;  %v155_v50 = vpop.xlane.xlu2 %154  ;;  %v475_v39 = vmul.f32 0.5, %v474_v62  ;;  %v316_v51 = vsub.f32 1.5, %v315_v48  ;;  %v1394_v52 = vmax.f32 %v158_v49, 1e-24  ;;  %vm308_vm11 = vweird.f32 %v1331_v59 }
  0xa2   :  { %v463_v41 = vmul.f32 %v1377_v12, %v1329_v11  ;;  %v1385_v43 = vpop.eup %911  ;;  %576 = vst.msk [vmem:[#allocation2 + $0x60] sm:$0xff] %vm83_vm0, %v544_v32  ;;  %v487_v19 = vmul.f32 %v1333_v60, %v486_v44  ;;  %v331_v8 = vsel %vm330_vm1, %v1325_v57, %v327_v6  ;;  %vm469_vm7 = vweird.f32 %v1377_v12 }
  0xa3   :  { %863 = vmatpush.xpose.msk.msra.mxu1 %vm83_vm0, %v627_v7  ;;  %v476_v10 = vsub.f32 1.5, %v475_v39  ;;  %v303_v61 = vmul.f32 %v1385_v43, %v1331_v59  ;;  %v543_v15 = vmul.f32 %v331_v8, %v1069_v20  ;;  %v317_v16 = vmul.f32 %v1339_v53, %v316_v51  ;;  %vm470_vm10 = vmor %vm468_vm8, %vm469_vm7 }
  0xa4   :  { %v464_v1 = vmul.f32 %v1377_v12, %v463_v41  ;;  %v491_v34 = vsel %vm490_vm3, %v1333_v60, %v487_v19  ;;  %v1414_v13 = vpop.eup %913  ;;  %915 = vrsqrt.f32 %v1394_v52  ;;  %vm309_vm9 = vweird.f32 %v1385_v43 }
  0xa5   :  { %v559_v57 = vmul.f32 %v491_v34, %v1083_v27  ;;  %v477_v17 = vmul.f32 %v1353_v9, %v476_v10  ;;  %v304_v0 = vmul.f32 %v1385_v43, %v303_v61  ;;  %575 = vst.msk [vmem:[#allocation2 + $0x58] sm:$0xff] %vm83_vm0, %v543_v15  ;;  %v321_v20 = vsel %vm320_vm5, %v1339_v53, %v317_v16  ;;  %vm310_vm12 = vmor %vm308_vm11, %vm309_vm9 }
  0xa6   :  { %v465_v22 = vmul.f32 0.5, %v464_v1  ;;  %v1424_v27 = vmax.f32 %v155_v50, 1e-24  ;;  %v542_v60 = vmul.f32 %v321_v20, %v1088_v28  ;;  %v293_v21 = vmul.f32 %v1414_v13, %v1370_v33  ;;  %v625_v31 = vld [vmem:[#allocation2 + $0xe0] sm:$0xff] }
  0xa7   :  { %864 = vmatpush.xpose.msk.msra.mxu1 %vm83_vm0, %v626_v58  ;;  %591 = vst.msk [vmem:[#allocation2 + $0xd8] sm:$0xff] %vm83_vm0, %v559_v57  ;;  %v481_v24 = vsel %vm480_vm6, %v1353_v9, %v477_v17  ;;  %v305_v23 = vmul.f32 0.5, %v304_v0  ;;  %v1438_v28 = vmax.f32 %v107_v42, 1e-24  ;;  %vm299_vm13 = vweird.f32 %v1414_v13 }
  0xa8   :  { %v466_v2 = vsub.f32 1.5, %v465_v22  ;;  %v152_v5 = vpop.xlane.xlu1 %151  ;;  %v104_v25 = vpop.xlane.xlu0 %103  ;;  %v558_v53 = vmul.f32 %v481_v24, %v1093_v29  ;;  %917 = vrsqrt.f32 %v1424_v27  ;;  %574 = vst.msk [vmem:[#allocation2 + $0x50] sm:$0xff] %vm83_vm0, %v542_v60  ;;  %v294_v29 = vmul.f32 %v1414_v13, %v293_v21 }
  0xa9   :  { %v101_v26 = vpop.xlane.xlu2 %100  ;;  %v306_v30 = vsub.f32 1.5, %v305_v23  ;;  %v609_v18 = vld [vmem:[#allocation2 + $0x60] sm:$0xff]  ;;  %v1445_v11 = vmax.f32 %v152_v5, 1e-24  ;;  %v1447_v35 = vmax.f32 %v104_v25, 1e-24  ;;  %919 = vrsqrt.f32 %v1438_v28 }
  0xaa   :  { %v467_v9 = vmul.f32 %v1377_v12, %v466_v2  ;;  %590 = vst.msk [vmem:[#allocation2 + $0xd0] sm:$0xff] %vm83_vm0, %v558_v53  ;;  %848 = vmatpush.xpose.msk.msra.mxu0 %vm83_vm0, %v609_v18  ;;  %v1454_v49 = vpop.eup %915  ;;  %v295_v32 = vmul.f32 0.5, %v294_v29  ;;  %v1469_v6 = vmax.f32 %v101_v26, 1e-24  ;;  %vm298_vm14 = vweird.f32 %v1370_v33 }
  0xab   :  { %865 = vmatpush.xpose.msk.msra.mxu1 %vm83_vm0, %v625_v31  ;;  %v307_v62 = vmul.f32 %v1385_v43, %v306_v30  ;;  %921 = vrsqrt.f32 %v1445_v11  ;;  %vm458_vm15 = vweird.f32 %v1394_v52  ;;  %vm300_vm1 = vmor %vm298_vm14, %vm299_vm13  ;;  %vm459_vm2 = vweird.f32 %v1454_v49 }
  0xac   :  { %v471_v40 = vsel %vm470_vm10, %v1377_v12, %v467_v9  ;;  %v453_v12 = vmul.f32 %v1454_v49, %v1394_v52  ;;  %923 = vrsqrt.f32 %v1447_v35  ;;  %v608_v59 = vld [vmem:[#allocation2 + $0x58] sm:$0xff]  ;;  %v296_v50 = vsub.f32 1.5, %v295_v32  ;;  %vm460_vm8 = vmor %vm458_vm15, %vm459_vm2 }
  0xad   :  { %v557_v42 = vmul.f32 %v471_v40, %v1107_v36  ;;  %v311_v44 = vsel %vm310_vm12, %v1385_v43, %v307_v62  ;;  %925 = vrsqrt.f32 %v1469_v6  ;;  %vm448_vm3 = vweird.f32 %v1424_v27 }
  0xae   :  { %v1464_v48 = vpop.eup %917  ;;  %v541_v36 = vmul.f32 %v311_v44, %v1112_v37  ;;  %849 = vmatpush.xpose.msk.msra.mxu0 %vm83_vm0, %v608_v59  ;;  %v624_v39 = vld [vmem:[#allocation2 + $0xd8] sm:$0xff]  ;;  %v454_v41 = vmul.f32 %v1454_v49, %v453_v12  ;;  %v297_v37 = vmul.f32 %v1414_v13, %v296_v50  ;;  %vm288_vm4 = vweird.f32 %v1438_v28 }
  0xaf   :  { %589 = vst.msk [vmem:[#allocation2 + $0xc8] sm:$0xff] %vm83_vm0, %v557_v42  ;;  %v443_v7 = vmul.f32 %v1464_v48, %v1424_v27  ;;  %866 = vmatpush.xpose.msk.msra.mxu1 %vm83_vm0, %v624_v39  ;;  %v607_v51 = vld [vmem:[#allocation2 + $0x50] sm:$0xff]  ;;  %v1483_v10 = vpop.eup %919  ;;  %vm438_vm5 = vweird.f32 %v1445_v11  ;;  %vm449_vm6 = vweird.f32 %v1464_v48  ;;  %vm278_vm7 = vweird.f32 %v1447_v35 }
  0xb0   :  { %v149_v43 = vpop.xlane.xlu0 %148  ;;  %v98_v19 = vpop.xlane.xlu1 %97  ;;  %573 = vst.msk [vmem:[#allocation2 + $0x48] sm:$0xff] %vm83_vm0, %v541_v36  ;;  %v455_v1 = vmul.f32 0.5, %v454_v41  ;;  %v301_v34 = vsel %vm300_vm1, %v1414_v13, %v297_v37  ;;  %v283_v16 = vmul.f32 %v1483_v10, %v1438_v28  ;;  %vm289_vm9 = vweird.f32 %v1483_v10  ;;  %vm450_vm11 = vmor %vm448_vm3, %vm449_vm6 }
  0xb1   :  { %v1481_v8 = vmax.f32 %v149_v43, 1e-24  ;;  %v146_v33 = vpop.xlane.xlu2 %145  ;;  %v444_v61 = vmul.f32 %v1464_v48, %v443_v7  ;;  %v1490_v15 = vpop.eup %921  ;;  %v623_v17 = vld [vmem:[#allocation2 + $0xd0] sm:$0xff]  ;;  %v540_v0 = vmul.f32 %v301_v34, %v1117_v38  ;;  %v1515_v5 = vmax.f32 %v98_v19, 1e-24  ;;  %vm290_vm14 = vmor %vm288_vm4, %vm289_vm9 }
  0xb2   :  { %850 = vmatpush.xpose.msk.msra.mxu0 %vm83_vm0, %v607_v51  ;;  %v1498_v57 = vmax.f32 %v146_v33, 1e-24  ;;  %v1500_v22 = vpop.eup %923  ;;  %v456_v58 = vsub.f32 1.5, %v455_v1  ;;  %v433_v13 = vmul.f32 %v1490_v15, %v1445_v11  ;;  %v284_v24 = vmul.f32 %v1483_v10, %v283_v16 }
  0xb3   :  { %927 = vrsqrt.f32 %v1481_v8  ;;  %v445_v20 = vmul.f32 0.5, %v444_v61  ;;  %867 = vmatpush.xpose.msk.msra.mxu1 %vm83_vm0, %v623_v17  ;;  %v273_v60 = vmul.f32 %v1500_v22, %v1447_v35  ;;  %572 = vst.msk [vmem:[#allocation2 + $0x40] sm:$0xff] %vm83_vm0, %v540_v0  ;;  %v1517_v53 = vpop.eup %925  ;;  %vm268_vm10 = vweird.f32 %v1469_v6 }
  0xb4   :  { %v457_v38 = vmul.f32 %v1454_v49, %v456_v58  ;;  %v434_v23 = vmul.f32 %v1490_v15, %v433_v13  ;;  %v285_v21 = vmul.f32 0.5, %v284_v24  ;;  %929 = vrsqrt.f32 %v1498_v57 }
  0xb5   :  { %v446_v2 = vsub.f32 1.5, %v445_v20  ;;  %v274_v26 = vmul.f32 %v1500_v22, %v273_v60  ;;  %v263_v31 = vmul.f32 %v1517_v53, %v1469_v6  ;;  %vm439_vm12 = vweird.f32 %v1490_v15 }
  0xb6   :  { %v622_v25 = vld [vmem:[#allocation2 + $0xc8] sm:$0xff]  ;;  %v461_v9 = vsel %vm460_vm8, %v1454_v49, %v457_v38  ;;  %v435_v18 = vmul.f32 0.5, %v434_v23  ;;  %v286_v49 = vsub.f32 1.5, %v285_v21  ;;  %vm279_vm13 = vweird.f32 %v1500_v22  ;;  %vm440_vm15 = vmor %vm438_vm5, %vm439_vm12 }
  0xb7   :  { %v447_v30 = vmul.f32 %v1464_v48, %v446_v2  ;;  %v606_v29 = vld [vmem:[#allocation2 + $0x48] sm:$0xff]  ;;  %868 = vmatpush.xpose.msk.msra.mxu1 %vm83_vm0, %v622_v25  ;;  %v556_v42 = vmul.f32 %v461_v9, %v1131_v45  ;;  %v275_v32 = vmul.f32 0.5, %v274_v26  ;;  %v264_v36 = vmul.f32 %v1517_v53, %v263_v31  ;;  %vm280_vm2 = vmor %vm278_vm7, %vm279_vm13 }
  0xb8   :  { %v143_v52 = vpop.xlane.xlu1 %142  ;;  %v95_v40 = vpop.xlane.xlu0 %94  ;;  %851 = vmatpush.xpose.msk.msra.mxu0 %vm83_vm0, %v606_v29  ;;  %v436_v59 = vsub.f32 1.5, %v435_v18  ;;  %v287_v50 = vmul.f32 %v1483_v10, %v286_v49  ;;  %931 = vrsqrt.f32 %v1515_v5  ;;  %vm269_vm1 = vweird.f32 %v1517_v53 }
  0xb9   :  { %v1532_v62 = vpop.eup %927  ;;  %v92_v44 = vpop.xlane.xlu2 %91  ;;  %v451_v12 = vsel %vm450_vm11, %v1464_v48, %v447_v30  ;;  %588 = vst.msk [vmem:[#allocation2 + $0xc0] sm:$0xff] %vm83_vm0, %v556_v42  ;;  %v276_v39 = vsub.f32 1.5, %v275_v32  ;;  %v265_v41 = vmul.f32 0.5, %v264_v36  ;;  %v1566_v19 = vmax.f32 %v143_v52, 1e-24  ;;  %vm270_vm4 = vmor %vm268_vm10, %vm269_vm1 }
  0xba   :  { %v423_v45 = vmul.f32 %v1532_v62, %v1481_v8  ;;  %v555_v27 = vmul.f32 %v451_v12, %v1141_v47  ;;  %v437_v48 = vmul.f32 %v1490_v15, %v436_v59  ;;  %v1556_v43 = vpop.eup %929  ;;  %v291_v47 = vsel %vm290_vm14, %v1483_v10, %v287_v50  ;;  %v605_v37 = vld [vmem:[#allocation2 + $0x40] sm:$0xff] }
  0xbb   :  { %v277_v28 = vmul.f32 %v1500_v22, %v276_v39  ;;  %v539_v51 = vmul.f32 %v291_v47, %v1136_v46  ;;  %v266_v10 = vsub.f32 1.5, %v265_v41  ;;  %vm429_vm3 = vweird.f32 %v1532_v62 }
  0xbc   :  { %v424_v7 = vmul.f32 %v1532_v62, %v423_v45  ;;  %587 = vst.msk [vmem:[#allocation2 + $0xb8] sm:$0xff] %vm83_vm0, %v555_v27  ;;  %v441_v33 = vsel %vm440_vm15, %v1490_v15, %v437_v48  ;;  %852 = vmatpush.xpose.msk.msra.mxu0 %vm83_vm0, %v605_v37  ;;  %v413_v46 = vmul.f32 %v1556_v43, %v1498_v57  ;;  %933 = vrsqrt.f32 %v1566_v19 }
  0xbd   :  { %v554_v11 = vmul.f32 %v441_v33, %v1155_v54  ;;  %v281_v61 = vsel %vm280_vm2, %v1500_v22, %v277_v28  ;;  %571 = vst.msk [vmem:[#allocation2 + $0x38] sm:$0xff] %vm83_vm0, %v539_v51  ;;  %v267_v35 = vmul.f32 %v1517_v53, %v266_v10  ;;  %v1590_v22 = vmax.f32 %v95_v40, 1e-24 }
  0xbe   :  { %v425_v1 = vmul.f32 0.5, %v424_v7  ;;  %v538_v15 = vmul.f32 %v281_v61, %v1160_v55  ;;  %v414_v54 = vmul.f32 %v1556_v43, %v413_v46  ;;  %v1592_v0 = vmax.f32 %v92_v44, 1e-24  ;;  %v1594_v58 = vpop.eup %931 }
  0xbf   :  { %586 = vst.msk [vmem:[#allocation2 + $0xb0] sm:$0xff] %vm83_vm0, %v554_v11  ;;  %v271_v20 = vsel %vm270_vm4, %v1517_v53, %v267_v35  ;;  %vm428_vm5 = vweird.f32 %v1481_v8  ;;  %v253_v2 = vmul.f32 %v1594_v58, %v1515_v5  ;;  %vm419_vm7 = vweird.f32 %v1556_v43 }
  0xc0   :  { %v426_v34 = vsub.f32 1.5, %v425_v1  ;;  %v140_v16 = vpop.xlane.xlu0 %139  ;;  %v89_v17 = vpop.xlane.xlu1 %88  ;;  %570 = vst.msk [vmem:[#allocation2 + $0x30] sm:$0xff] %vm83_vm0, %v538_v15  ;;  %v621_v24 = vld [vmem:[#allocation2 + $0xc0] sm:$0xff]  ;;  %v537_v60 = vmul.f32 %v271_v20, %v1165_v56  ;;  %vm430_vm6 = vmor %vm428_vm5, %vm429_vm3  ;;  %v415_v38 = vmul.f32 0.5, %v414_v54  ;;  %935 = vrsqrt.f32 %v1590_v22 }
  0xc1   :  { %v137_v55 = vpop.xlane.xlu2 %136  ;;  %v1600_v6 = vmax.f32 %v140_v16, 1e-24  ;;  %869 = vmatpush.xpose.msk.msra.mxu1 %vm83_vm0, %v621_v24  ;;  %v254_v53 = vmul.f32 %v1594_v58, %v253_v2  ;;  %937 = vrsqrt.f32 %v1592_v0  ;;  %v1620_v26 = vmax.f32 %v89_v17, 1e-24 }
  0xc2   :  { %v427_v13 = vmul.f32 %v1532_v62, %v426_v34  ;;  %v1611_v8 = vmax.f32 %v137_v55, 1e-24  ;;  %569 = vst.msk [vmem:[#allocation2 + $0x28] sm:$0xff] %vm83_vm0, %v537_v60  ;;  %v416_v25 = vsub.f32 1.5, %v415_v38  ;;  %v1617_v21 = vpop.eup %933  ;;  %vm418_vm8 = vweird.f32 %v1498_v57  ;;  %v814_v38 = vld [vmem:[%s1797_s0] sm:$0xff] }
  0xc3   :  { %939 = vrsqrt.f32 %v1600_v6  ;;  %v620_v9 = vld [vmem:[#allocation2 + $0xb8] sm:$0xff]  ;;  %v255_v18 = vmul.f32 0.5, %v254_v53  ;;  %vm420_vm9 = vmor %vm418_vm8, %vm419_vm7  ;;  %vm258_vm10 = vweird.f32 %v1515_v5  ;;  %vm259_vm11 = vweird.f32 %v1594_v58 }
  0xc4   :  { %v431_v23 = vsel %vm430_vm6, %v1532_v62, %v427_v13  ;;  %v417_v30 = vmul.f32 %v1556_v43, %v416_v25  ;;  %v604_v31 = vld [vmem:[#allocation2 + $0x38] sm:$0xff]  ;;  %941 = vrsqrt.f32 %v1611_v8  ;;  %vm408_vm12 = vweird.f32 %v1566_v19  ;;  %vm260_vm14 = vmor %vm258_vm10, %vm259_vm11 }
  0xc5   :  { %v553_v56 = vmul.f32 %v431_v23, %v1179_v63  ;;  %v403_v63 = vmul.f32 %v1617_v21, %v1566_v19  ;;  %870 = vmatpush.xpose.msk.msra.mxu1 %vm83_vm0, %v620_v9  ;;  %853 = vmatpush.xpose.msk.msra.mxu0 %vm83_vm0, %v604_v31  ;;  %v256_v62 = vsub.f32 1.5, %v255_v18  ;;  %943 = vrsqrt.f32 %v1620_v26  ;;  %v953_v9 = vld [vmem:[%s1799_s2 + $0x18] sm:$0xff]  ;;  %v954_v31 = vld [vmem:[%s1799_s2 + $0x10] sm:$0xff] }
  0xc6   :  { %v619_v29 = vld [vmem:[#allocation2 + $0xb0] sm:$0xff]  ;;  %v421_v40 = vsel %vm420_vm9, %v1556_v43, %v417_v30  ;;  %v1637_v32 = vpop.eup %935  ;;  %vm248_vm13 = vweird.f32 %v1590_v22  ;;  %vm409_vm15 = vweird.f32 %v1617_v21  ;;  %vm238_vm1 = vweird.f32 %v1592_v0 }
  0xc7   :  { %585 = vst.msk [vmem:[#allocation2 + $0xa8] sm:$0xff] %vm83_vm0, %v553_v56  ;;  %v404_v42 = vmul.f32 %v1617_v21, %v403_v63  ;;  %v603_v49 = vld [vmem:[#allocation2 + $0x30] sm:$0xff]  ;;  %v552_v44 = vmul.f32 %v421_v40, %v1189_v4  ;;  %v1645_v36 = vpop.eup %937  ;;  %v257_v45 = vmul.f32 %v1594_v58, %v256_v62  ;;  %v243_v50 = vmul.f32 %v1637_v32, %v1590_v22  ;;  %vm410_vm5 = vmor %vm408_vm12, %vm409_vm15 }
  0xc8   :  { %v134_v57 = vpop.xlane.xlu1 %133  ;;  %v86_v52 = vpop.xlane.xlu0 %85  ;;  %v233_v4 = vmul.f32 %v1645_v36, %v1592_v0  ;;  %vm398_vm2 = vweird.f32 %v1600_v6  ;;  %vm249_vm3 = vweird.f32 %v1637_v32  ;;  %vm388_vm4 = vweird.f32 %v1611_v8 }
  0xc9   :  { %v1641_v12 = vmax.f32 %v134_v57, 1e-24  ;;  %v1643_v59 = vmax.f32 %v86_v52, 1e-24  ;;  %v405_v27 = vmul.f32 0.5, %v404_v42  ;;  %871 = vmatpush.xpose.msk.msra.mxu1 %vm83_vm0, %v619_v29  ;;  %v1652_v39 = vpop.eup %939  ;;  %584 = vst.msk [vmem:[#allocation2 + $0xa0] sm:$0xff] %vm83_vm0, %v552_v44  ;;  %854 = vmatpush.xpose.msk.msra.mxu0 %vm83_vm0, %v603_v49  ;;  %v261_v48 = vsel %vm260_vm14, %v1594_v58, %v257_v45  ;;  %vm250_vm9 = vmor %vm248_vm13, %vm249_vm3 }
  0xca   :  { %v244_v7 = vmul.f32 %v1637_v32, %v243_v50  ;;  %v393_v5 = vmul.f32 %v1652_v39, %v1600_v6  ;;  %v1670_v43 = vpop.eup %941  ;;  %v536_v47 = vmul.f32 %v261_v48, %v1184_v3  ;;  %v234_v28 = vmul.f32 %v1645_v36, %v233_v4  ;;  %v602_v3 = vld [vmem:[#allocation2 + $0x28] sm:$0xff]  ;;  %v955_v6 = vld [vmem:[%s1799_s2 + $0x90] sm:$0xff] }
  0xcb   :  { %945 = vrsqrt.f32 %v1641_v12  ;;  %v406_v41 = vsub.f32 1.5, %v405_v27  ;;  %v1676_v51 = vpop.eup %943  ;;  %v383_v11 = vmul.f32 %v1670_v43, %v1611_v8  ;;  %vm239_vm6 = vweird.f32 %v1645_v36  ;;  %v956_v8 = vld [vmem:[%s1799_s2 + $0x88] sm:$0xff] }
  0xcc   :  { %947 = vrsqrt.f32 %v1643_v59  ;;  %v245_v10 = vmul.f32 0.5, %v244_v7  ;;  %v394_v1 = vmul.f32 %v1652_v39, %v393_v5  ;;  %568 = vst.msk [vmem:[#allocation2 + $0x20] sm:$0xff] %vm83_vm0, %v536_v47  ;;  %v235_v61 = vmul.f32 0.5, %v234_v28  ;;  %vm240_vm11 = vmor %vm238_vm1, %vm239_vm6  ;;  %v957_v50 = vld [vmem:[%s1799_s2 + $0x8] sm:$0xff]  ;;  %v958_v5 = vld [vmem:[%s1799_s2 + $0x80] sm:$0xff] }
  0xcd   :  { %v407_v33 = vmul.f32 %v1617_v21, %v406_v41  ;;  %vm399_vm7 = vweird.f32 %v1652_v39  ;;  %v223_v46 = vmul.f32 %v1676_v51, %v1620_v26  ;;  %855 = vmatpush.xpose.msk.msra.mxu0 %vm83_vm0, %v602_v3  ;;  %v384_v16 = vmul.f32 %v1670_v43, %v383_v11 }
  0xce   :  { %v618_v37 = vld [vmem:[#allocation2 + $0xa8] sm:$0xff]  ;;  %v246_v35 = vsub.f32 1.5, %v245_v10  ;;  %v395_v34 = vmul.f32 0.5, %v394_v1  ;;  %v236_v54 = vsub.f32 1.5, %v235_v61  ;;  %vm389_vm8 = vweird.f32 %v1670_v43  ;;  %vm400_vm12 = vmor %vm398_vm2, %vm399_vm7  ;;  %v596_v61 = vld [vmem:[%s1798_s1] sm:$0xff]  ;;  %s987_s1 = smov [#allocation3]  }
  0xcf   :  { %872 = vmatpush.xpose.msk.msra.mxu1 %vm83_vm0, %v618_v37  ;;  %v411_v15 = vsel %vm410_vm5, %v1617_v21, %v407_v33  ;;  %v224_v55 = vmul.f32 %v1676_v51, %v223_v46  ;;  %v385_v13 = vmul.f32 0.5, %v384_v16  ;;  %vm229_vm10 = vweird.f32 %v1676_v51  ;;  %vm390_vm13 = vmor %vm388_vm4, %vm389_vm8  ;;  %v959_v37 = vld [vmem:[%s1799_s2] sm:$0xff]  ;;  %s834_s11 = sshll.u32 %s987_s1, 4  ;;  %s835_s11 = int_to_ptr.vmem [resolvable:$true] %s834_s11 }
  0xd0   :  { %v551_v19 = vmul.f32 %v411_v15, %v1203_v14  ;;  %v247_v58 = vmul.f32 %v1637_v32, %v246_v35  ;;  %v396_v20 = vsub.f32 1.5, %v395_v34  ;;  %v617_v60 = vld [vmem:[#allocation2 + $0xa0] sm:$0xff]  ;;  %v237_v14 = vmul.f32 %v1645_v36, %v236_v54 }
  0xd1   :  { %v1696_v17 = vpop.eup %945  ;;  %v225_v23 = vmul.f32 0.5, %v224_v55  ;;  %v386_v53 = vsub.f32 1.5, %v385_v13  ;;  %v986_v21 = vmov 0   ;;  %vm228_vm14 = vweird.f32 %v1620_v26 }
  0xd2   :  { %v373_v24 = vmul.f32 %v1696_v17, %v1641_v12  ;;  %v1707_v2 = vpop.eup %947  ;;  %583 = vst.msk [vmem:[#allocation2 + $0x98] sm:$0xff] %vm83_vm0, %v551_v19  ;;  %v251_v56 = vsel %vm250_vm9, %v1637_v32, %v247_v58  ;;  %v397_v25 = vmul.f32 %v1652_v39, %v396_v20  ;;  %883 = vset.pattern.permute.xlu2 %v986_v21  ;;  %vm230_vm15 = vmor %vm228_vm14, %vm229_vm10  ;;  %vm379_vm1 = vweird.f32 %v1696_v17 }
  0xd3   :  { %873 = vmatpush.xpose.msk.msra.mxu1 %vm83_vm0, %v617_v60  ;;  %884 = vset.pattern.permute.xlu0 %v986_v21  ;;  %v535_v30 = vmul.f32 %v953_v9, %v251_v56  ;;  %v241_v18 = vsel %vm240_vm11, %v1645_v36, %v237_v14  ;;  %v226_v0 = vsub.f32 1.5, %v225_v23  ;;  %v213_v63 = vmul.f32 %v1707_v2, %v1643_v59  ;;  %v601_v62 = vld [vmem:[#allocation2 + $0x20] sm:$0xff] }
  0xd4   :  { %v374_v22 = vmul.f32 %v1696_v17, %v373_v24  ;;  %819 = vperm.xlu2 %883, %v814_v38   ;;  %v534_v29 = vmul.f32 %v954_v31, %v241_v18  ;;  %v401_v57 = vsel %vm400_vm12, %v1652_v39, %v397_v25  ;;  %v387_v52 = vmul.f32 %v1670_v43, %v386_v53 }
  0xd5   :  { %567 = vst.msk [vmem:[#allocation2 + $0x18] sm:$0xff] %vm83_vm0, %v535_v30  ;;  %v550_v42 = vmul.f32 %v955_v6, %v401_v57  ;;  %v227_v49 = vmul.f32 %v1676_v51, %v226_v0  ;;  %v214_v32 = vmul.f32 %v1707_v2, %v213_v63  ;;  %856 = vmatpush.xpose.msk.msra.mxu0 %vm83_vm0, %v601_v62  ;;  %vm378_vm2 = vweird.f32 %v1641_v12 }
  0xd6   :  { %v375_v40 = vmul.f32 0.5, %v374_v22  ;;  %566 = vst.msk [vmem:[#allocation2 + $0x10] sm:$0xff] %vm83_vm0, %v534_v29  ;;  %v391_v44 = vsel %vm390_vm13, %v1670_v43, %v387_v52  ;;  %vm380_vm3 = vmor %vm378_vm2, %vm379_vm1  ;;  %vm219_vm4 = vweird.f32 %v1707_v2  ;;  %vm218_vm5 = vweird.f32 %v1643_v59 }
  0xd7   :  { %582 = vst.msk [vmem:[#allocation2 + $0x90] sm:$0xff] %vm83_vm0, %v550_v42  ;;  %v549_v26 = vmul.f32 %v956_v8, %v391_v44  ;;  %v231_v45 = vsel %vm230_vm15, %v1676_v51, %v227_v49  ;;  %v215_v27 = vmul.f32 0.5, %v214_v32  ;;  %vm220_vm6 = vmor %vm218_vm5, %vm219_vm4  ;;  %v811_v38 = vlaneseq }
  0xd8   :  { %v376_v36 = vsub.f32 1.5, %v375_v40  ;;  %v533_v39 = vmul.f32 %v957_v50, %v231_v45 }
  0xd9   :  { %v616_v48 = vld [vmem:[#allocation2 + $0x98] sm:$0xff]  ;;  %581 = vst.msk [vmem:[#allocation2 + $0x88] sm:$0xff] %vm83_vm0, %v549_v26  ;;  %v216_v41 = vsub.f32 1.5, %v215_v27  ;;  %v812_v25 = vand.u32 127, %v811_v38 }
  0xda   :  { %v377_v4 = vmul.f32 %v1696_v17, %v376_v36  ;;  %874 = vmatpush.xpose.msk.msra.mxu1 %vm83_vm0, %v616_v48  ;;  %565 = vst.msk [vmem:[#allocation2 + $0x8] sm:$0xff] %vm83_vm0, %v533_v39 }
  0xdb   :  { %v217_v12 = vmul.f32 %v1707_v2, %v216_v41  ;;  %v813_v18 = vadd.s32 128, %v812_v25 }
  0xdc   :  { %v381_v7 = vsel %vm380_vm3, %v1696_v17, %v377_v4  ;;  %v600_v47 = vld [vmem:[#allocation2 + $0x18] sm:$0xff] }
  0xdd   :  { %v548_v43 = vmul.f32 %v958_v5, %v381_v7  ;;  %v221_v28 = vsel %vm220_vm6, %v1707_v2, %v217_v12  ;;  %857 = vmatpush.xpose.msk.msra.mxu0 %vm83_vm0, %v600_v47  ;;  %v599_v10 = vld [vmem:[#allocation2 + $0x10] sm:$0xff] }
  0xde   :  { %v532_v51 = vmul.f32 %v959_v37, %v221_v28  ;;  %v615_v33 = vld [vmem:[#allocation2 + $0x90] sm:$0xff] }
  0xdf   :  { %580 = vst.msk [vmem:[#allocation2 + $0x80] sm:$0xff] %vm83_vm0, %v548_v43  ;;  %875 = vmatpush.xpose.msk.msra.mxu1 %vm83_vm0, %v615_v33 }
  0xe0   :  { %564 = vst.msk [vmem:[#allocation2] sm:$0xff] %vm83_vm0, %v532_v51  ;;  %v614_v1 = vld [vmem:[#allocation2 + $0x88] sm:$0xff] }
  0xe1   :  { %858 = vmatpush.xpose.msk.msra.mxu0 %vm83_vm0, %v599_v10  ;;  %v598_v59 = vld [vmem:[#allocation2 + $0x8] sm:$0xff] }
  0xe3   :  { %876 = vmatpush.xpose.msk.msra.mxu1 %vm83_vm0, %v614_v1 }
  0xe5   :  { %859 = vmatpush.xpose.msk.msra.mxu0 %vm83_vm0, %v598_v59 }
  0xe6   :  { %v613_v11 = vld [vmem:[#allocation2 + $0x80] sm:$0xff] }
  0xe7   :  { %v597_v3 = vld [vmem:[#allocation2] sm:$0xff]  ;;  %877 = vmatpush.xpose.msk.msra.mxu1 %vm83_vm0, %v613_v11 }
  0xe9   :  { %860 = vmatpush.xpose.msk.msra.mxu0 %vm83_vm0, %v597_v3 }
  0xea   :  { %878 = vmatmul.msk.f32.vlgmr.msra.gmra.mxu1 %vm83_vm0, %v596_v61 }
  0xec   :  { %861 = vmatmul.msk.f32.vlgmr.msra.gmra.mxu0 %vm83_vm0, %v596_v61 }
 0x12e   :  { %v820_v57 = vpop.permute.xlu2 %819 }
 0x12f   :  { %vm822_vm10 = vcmp.eq.s32.totalorder %v813_v18, %v820_v57  ;;  %vm821_vm12 = vcmp.eq.s32.totalorder %v812_v25, %v820_v57 }
 0x167   :  { %v766_v46 = vpop.f32.mrf.mxu1 }
 0x168   :  { %v770_v15 = vmul.f32 %v766_v46, %v766_v46  ;;  %v800_v40 = vmul.f32 0.87758255, %v766_v46  ;;  %v880_v32 = vadd.f32 -0.23971277, %v766_v46  ;;  %vm806_vm11 = vcmp.gt.f32.partialorder %v766_v46, -0.87758255 }
 0x169   :  { %v746_v35 = vpop.f32.mrf.mxu0 }
 0x16a   :  { %v769_v34 = vmul.f32 %v746_v35, %v746_v35  ;;  %v772_v16 = vsub.f32 1.0, %v770_v15  ;;  %v799_v6 = vmul.f32 0.87758255, %v746_v35  ;;  %v879_v36 = vadd.f32 -0.23971277, %v746_v35 }
 0x16b   :  { %vm805_vm13 = vcmp.gt.f32.partialorder %v746_v35, -0.87758255 }
 0x16c   :  { %v771_v17 = vsub.f32 1.0, %v769_v34  ;;  %v774_v19 = vmax.f32 %v772_v16, 0.0 }
 0x16e   :  { %v773_v54 = vmax.f32 %v771_v17, 0.0  ;;  %949 = vrsqrt.f32 %v774_v19  ;;  %vm794_vm0 = vcmp.eq.f32.partialorder %v774_v19, inf  ;;  %v797_v30 = vand.u32 2147483648, %v774_v19 }
 0x16f   :  { %vm796_vm8 = vcmp.eq.f32.partialorder %v774_v19, 0.0 }
 0x170   :  { %951 = vrsqrt.f32 %v773_v54  ;;  %vm782_vm7 = vcmp.eq.f32.partialorder %v773_v54, inf  ;;  %v785_v0 = vand.u32 2147483648, %v773_v54  ;;  %vm784_vm9 = vcmp.eq.f32.partialorder %v773_v54, 0.0 }
 0x174   :  { %v950_v55 = vpop.eup %949 }
 0x175   :  { %v788_v20 = vmul.f32 %v950_v55, %v774_v19 }
 0x176   :  { %v952_v58 = vpop.eup %951 }
 0x177   :  { %v776_v13 = vmul.f32 %v952_v58, %v773_v54  ;;  %v789_v24 = vmul.f32 %v950_v55, %v788_v20 }
 0x179   :  { %v777_v60 = vmul.f32 %v952_v58, %v776_v13  ;;  %v790_v2 = vmul.f32 0.5, %v789_v24 }
 0x17b   :  { %v778_v14 = vmul.f32 0.5, %v777_v60  ;;  %v791_v23 = vsub.f32 1.5, %v790_v2 }
 0x17d   :  { %v779_v56 = vsub.f32 1.5, %v778_v14  ;;  %v792_v53 = vmul.f32 %v950_v55, %v791_v23 }
 0x17f   :  { %v780_v22 = vmul.f32 %v952_v58, %v779_v56  ;;  %v793_v21 = vmul.f32 %v792_v53, %v774_v19 }
 0x181   :  { %v781_v9 = vmul.f32 %v780_v22, %v773_v54  ;;  %v795_v63 = vsel %vm794_vm0, %v774_v19, %v793_v21 }
 0x182   :  { %v798_v29 = vsel %vm796_vm8, %v797_v30, %v795_v63 }
 0x183   :  { %v783_v31 = vsel %vm782_vm7, %v773_v54, %v781_v9  ;;  %v802_v62 = vmul.f32 0.47942555, %v798_v29 }
 0x184   :  { %v786_v52 = vsel %vm784_vm9, %v785_v0, %v783_v31 }
 0x185   :  { %v801_v42 = vmul.f32 0.47942555, %v786_v52  ;;  %v804_v49 = vsub.f32 %v800_v40, %v802_v62 }
 0x187   :  { %v803_v44 = vsub.f32 %v799_v6, %v801_v42  ;;  %v810_v8 = vsel %vm806_vm11, %v804_v49, %v880_v32 }
 0x188   :  { %v824_v45 = vsel %vm822_vm10, %v810_v8, %v766_v46 }
 0x189   :  { %v809_v26 = vsel %vm805_vm13, %v803_v44, %v879_v36  ;;  %v826_v50 = vmul.f32 30.0, %v824_v45 }
 0x18a   :  { %v823_v27 = vsel %vm821_vm12, %v809_v26, %v746_v35 }
 0x18b   :  { %v825_v39 = vmul.f32 30.0, %v823_v27  ;;  %828 = vst [vmem:[#allocation3 + $0x8] sm:$0xff] %v826_v50 }
 0x18d   :  { %827 = vst [vmem:[#allocation3] sm:$0xff] %v825_v39 }
 0x18e   :  { %839 = dma.vmem_to_hbm [thread:$0]  %s835_s11, 256, %s837_s14, [#allocation4]  }
 0x18f   :  { %984 = dma.done.wait [#allocation4], 256  }
 0x190   :  { %985 = vsyncadd [#allocation4], 4294967040 }
 0x191   :  { %844 = vsyncpa [#allocation4], 1 }

</bundles_post_ra>
